<compile_context>
chip_gen: v5e
topology: v5e:2x2
jax: 0.10.0
libtpu: 0.0.40
codegen_flags: <defaults>
</compile_context>

<pallas_src>
import functools

import jax
import jax.numpy as jnp
from jax import lax
from jax.experimental import pallas as pl
from jax.experimental.pallas import tpu as pltpu


# ----------------------------------------------------------------------------
# Small-shape path: one MXU call on the full (unpadded) operands.
# Block shapes equal to the full array dims are permitted by the (8,128) rule.
# ----------------------------------------------------------------------------
def _small_matmul_kernel(x_ref, w_ref, o_ref):
    o_ref[...] = jnp.dot(
        x_ref[...], w_ref[...], preferred_element_type=jnp.float32
    ).astype(o_ref.dtype)


@jax.jit
def _small_matmul(x, w):
    M, K = x.shape
    _, N = w.shape
    return pl.pallas_call(
        _small_matmul_kernel,
        out_shape=jax.ShapeDtypeStruct((M, N), x.dtype),
        grid=(1,),
        in_specs=[
            pl.BlockSpec((M, K), lambda i: (0, 0)),
            pl.BlockSpec((K, N), lambda i: (0, 0)),
        ],
        out_specs=pl.BlockSpec((M, N), lambda i: (0, 0)),
    )(x, w)


# ----------------------------------------------------------------------------
# Large-shape path: tiled, pipelined matmul with an f32 VMEM accumulator.
# ----------------------------------------------------------------------------
def _tiled_matmul_kernel(x_ref, w_ref, o_ref, acc_ref):
    @pl.when(pl.program_id(2) == 0)
    def _():
        acc_ref[...] = jnp.zeros_like(acc_ref)

    acc_ref[...] += jnp.dot(
        x_ref[...], w_ref[...], preferred_element_type=jnp.float32
    )

    @pl.when(pl.program_id(2) == pl.num_programs(2) - 1)
    def _():
        o_ref[...] = acc_ref[...].astype(o_ref.dtype)


def _round_up(v, m):
    return ((v + m - 1) // m) * m


@functools.partial(jax.jit, static_argnames=("tm", "tn", "tk"))
def _tiled_matmul(x, w, tm=128, tn=128, tk=256):
    M, K = x.shape
    _, N = w.shape
    Mp, Kp, Np = _round_up(M, tm), _round_up(K, tk), _round_up(N, tn)
    # Pad (inside this single jitted executable) only when shapes are not
    # tile-aligned; for aligned shapes these branches are compile-time no-ops.
    if (Mp, Kp) != (M, K):
        x = jnp.pad(x, ((0, Mp - M), (0, Kp - K)))
    if (Kp, Np) != (K, N):
        w = jnp.pad(w, ((0, Kp - K), (0, Np - N)))
    out = pl.pallas_call(
        _tiled_matmul_kernel,
        out_shape=jax.ShapeDtypeStruct((Mp, Np), x.dtype),
        grid=(Mp // tm, Np // tn, Kp // tk),
        in_specs=[
            pl.BlockSpec((tm, tk), lambda i, j, k: (i, k)),
            pl.BlockSpec((tk, tn), lambda i, j, k: (k, j)),
        ],
        out_specs=pl.BlockSpec((tm, tn), lambda i, j, k: (i, j)),
        scratch_shapes=[pltpu.VMEM((tm, tn), jnp.float32)],
        compiler_params=pltpu.CompilerParams(
            dimension_semantics=("parallel", "parallel", "arbitrary")
        ),
    )(x, w)
    if (Mp, Np) != (M, N):
        out = out[:M, :N]
    return out


# Switch to the tiled path once the operands are big enough that a single
# whole-array block would give no pipelining / risk VMEM pressure.
_TILED_MIN_BYTES = 4 * 1024 * 1024


def my_dict_dense_forward(x, params, choice="linear1"):
    """Equivalent of MyDictDense.forward(x, choice) == torch.mm(x, params[choice])."""
    w = params[choice]
    M, K = x.shape
    Kw, N = w.shape
    assert K == Kw, "inner dimensions must match"
    total_bytes = 4 * (M * K + K * N + M * N)
    if total_bytes <= _TILED_MIN_BYTES:
        # NOTE: at the module's native 1x3 @ 3x{3,1,2} sizes even one custom-call
        # dispatch is launch-overhead-bound; a plain jitted jnp.dot would be
        # marginally faster, but we keep the (single-dispatch) Pallas path.
        return _small_matmul(x, w)
    return _tiled_matmul(x, w)


def init_params(key):
    """Deterministic stand-in for the ParameterDict of torch.randn weights."""
    k1, k2, k3 = jax.random.split(key, 3)
    return {
        "linear1": jax.random.normal(k1, (3, 3), dtype=jnp.float32),
        "linear2": jax.random.normal(k2, (3, 1), dtype=jnp.float32),
        "linear3": jax.random.normal(k3, (3, 2), dtype=jnp.float32),
    }


if __name__ == "__main__":
    key = jax.random.PRNGKey(0)
    key_params, key_big = jax.random.split(key)
    params = init_params(key_params)

    # Input consistent with the module's usage: x of shape (1, 3).
    x = jnp.ones((1, 3), dtype=jnp.float32)

    ok = True
    for choice in ("linear1", "linear2", "linear3"):
        out = jax.block_until_ready(my_dict_dense_forward(x, params, choice=choice))
        ref = jnp.dot(x, params[choice], precision=lax.Precision.HIGHEST)
        if out.shape != ref.shape or not jnp.allclose(out, ref, atol=1e-4, rtol=1e-4):
            ok = False
            print(f"MISMATCH for {choice}: got {out}, expected {ref}")

    # Exercise the tiled / pipelined path as well (same forward, larger weights).
    kb1, kb2 = jax.random.split(key_big)
    xb = jax.random.normal(kb1, (512, 1024), dtype=jnp.float32)
    big_params = {"linear1": jax.random.normal(kb2, (1024, 512), dtype=jnp.float32)}
    out_big = jax.block_until_ready(
        my_dict_dense_forward(xb, big_params, choice="linear1")
    )
    ref_big = jnp.dot(xb, big_params["linear1"], precision=lax.Precision.HIGHEST)
    if out_big.shape != ref_big.shape or not jnp.allclose(
        out_big, ref_big, atol=1e-2, rtol=1e-3
    ):
        ok = False
        print("MISMATCH for tiled path")

    if ok:
        print("KERNEL_OK")
</pallas_src>

<mosaic_0001>
module attributes {stable_mosaic.version = 11 : i64} {
  func.func @_small_matmul_kernel(%arg0: i32, %arg1: memref<1x3xf32, #tpu.memory_space<vmem>>, %arg2: memref<3x3xf32, #tpu.memory_space<vmem>>, %arg3: memref<1x3xf32, #tpu.memory_space<vmem>>) attributes {dimension_semantics = [#tpu.dimension_semantics<arbitrary>], iteration_bounds = array<i64: 1>, scalar_prefetch = 0 : i64, scratch_operands = 0 : i64, tpu.core_type = #tpu.core_type<tc>, window_params = [{pipeline_mode = #tpu.pipeline_mode<synchronous>, transform_indices = @transform_0, window_bounds = array<i64: 1, 3>}, {pipeline_mode = #tpu.pipeline_mode<synchronous>, transform_indices = @transform_1, window_bounds = array<i64: 3, 3>}, {pipeline_mode = #tpu.pipeline_mode<synchronous>, transform_indices = @transform_2, window_bounds = array<i64: 1, 3>}]} {
    %c0 = arith.constant 0 : index
    %c0_0 = arith.constant 0 : index
    %0 = vector.load %arg1[%c0, %c0_0] : memref<1x3xf32, #tpu.memory_space<vmem>>, vector<1x3xf32>
    %c0_1 = arith.constant 0 : index
    %c0_2 = arith.constant 0 : index
    %1 = vector.load %arg2[%c0_1, %c0_2] : memref<3x3xf32, #tpu.memory_space<vmem>>, vector<3x3xf32>
    %cst = arith.constant dense<0.000000e+00> : vector<1x3xf32>
    %2 = tpu.matmul %0, %1, %cst {dimension_numbers = #tpu.dot_dimension_numbers<[1], [0], [0], [1], [0, 0, 1, 1], [], []>} : vector<1x3xf32>, vector<3x3xf32>, vector<1x3xf32> -> vector<1x3xf32>
    %c0_3 = arith.constant 0 : index
    %c0_4 = arith.constant 0 : index
    %3 = vector.load %arg3[%c0_3, %c0_4] : memref<1x3xf32, #tpu.memory_space<vmem>>, vector<1x3xf32>
    tpu.vector_store %arg3[%c0_3, %c0_4], %2 {strides = array<i32>} : memref<1x3xf32, #tpu.memory_space<vmem>>, vector<1x3xf32>,
    return
  }
  func.func @transform_0(%arg0: i32) -> (i32, i32) {
    %c0_i32 = arith.constant 0 : i32
    %c0_i32_0 = arith.constant 0 : i32
    %c0_i32_1 = arith.constant 0 : i32
    return %c0_i32, %c0_i32_0 : i32, i32
  }
  func.func @transform_1(%arg0: i32) -> (i32, i32) {
    %c0_i32 = arith.constant 0 : i32
    %c0_i32_0 = arith.constant 0 : i32
    %c0_i32_1 = arith.constant 0 : i32
    return %c0_i32, %c0_i32_0 : i32, i32
  }
  func.func @transform_2(%arg0: i32) -> (i32, i32) {
    %c0_i32 = arith.constant 0 : i32
    %c0_i32_0 = arith.constant 0 : i32
    %c0_i32_1 = arith.constant 0 : i32
    return %c0_i32, %c0_i32_0 : i32, i32
  }
}

</mosaic_0001>

<bundles_post_ra>
// kernel: _small_matmul.1
= control target key start
LH: loop header
LB: loop body
LE: loop exit
PB: predicated region body
PF: predicated region fallthrough
CT: control target
= control target key end

     0   :  { %7 = vsyncpa [#allocation3], 0  ;;  %s200_s0 = inlined_call_operand.hbm [shape: f32[1,3], index: 0, kind: input, shape index: {}]   ;;  %s201_s1 = inlined_call_operand.hbm [shape: f32[3,3], index: 1, kind: input, shape index: {}]   ;;  %s202_s2 = inlined_call_operand.hbm [shape: f32[1,3], index: 2, kind: output, shape index: {}]  }
   0x1   :  { %8 = vsyncpa [#allocation6], 0 }
   0x2   :  { %9 = vsyncpa [#allocation4], 0  ;;  %s15_s11 = sshll.u32 %s200_s0, 4  ;;  %s173_s12 = smov [#allocation2]   ;;  %s16_s11 = int_to_ptr.hbm [resolvable:$true] %s15_s11 }
   0x3   :  { %s17_s13 = sshll.u32 %s173_s12, 4  ;;  %s26_s16 = sshll.u32 %s201_s1, 4  ;;  %s18_s13 = int_to_ptr.vmem [resolvable:$true] %s17_s13  ;;  %s27_s16 = int_to_ptr.hbm [resolvable:$true] %s26_s16 }
   0x4   :  { %20 = dma.hbm_to_vmem [thread:$0]  %s16_s11, 16, %s18_s13, [#allocation3]  }
   0x5   :  { %s174_s17 = smov [#allocation5]  }
   0x6   :  { %s28_s18 = sshll.u32 %s174_s17, 4  ;;  %s29_s18 = int_to_ptr.vmem [resolvable:$true] %s28_s18 }
   0x7   :  { %31 = dma.hbm_to_vmem [thread:$0]  %s27_s16, 64, %s29_s18, [#allocation6]  }
   0x8   :  { %167 = dma.done.wait [#allocation3], 16  }
   0x9   :  { %168 = vsyncadd [#allocation3], 4294967280 }
   0xa   :  { %169 = dma.done.wait [#allocation6], 64  }
   0xb   :  { %170 = vsyncadd [#allocation6], 4294967232  ;;  %vm46_vm0 = vcmask 1042432   ;;  %vm42_vm1 = vcmask 23552   ;;  %v41_v0 = vld [vmem:[#allocation5] sm:$0x7] }
   0xc   :  { %v40_v1 = vld [vmem:[#allocation2] sm:$0x1]  ;;  %90 = vmatpush.msk.msra.mxu0 %vm46_vm0, %v41_v0  ;;  %s175_s0 = smov [#allocation7]   ;;  %s79_s21 = sshll.u32 %s202_s2, 4  ;;  %vm70_vm2 = vcmask 16384   ;;  %s80_s21 = int_to_ptr.hbm [resolvable:$true] %s79_s21 }
   0xd   :  { %91 = vmatmul.msk.f32.vlgmr.msra.gmra.mxu0 %vm42_vm1, %v40_v1  ;;  %s77_s19 = sshll.u32 %s175_s0, 4  ;;  %s78_s19 = int_to_ptr.vmem [resolvable:$true] %s77_s19 }
  0x8a   :  { %v67_v2 = vpop.f32.mrf.mxu0 }
  0x8b   :  { %71 = vst.msk [vmem:[#allocation7] sm:$0x1] %vm70_vm2, %v67_v2 }
  0x8c   :  { %82 = dma.vmem_to_hbm [thread:$0]  %s78_s19, 16, %s80_s21, [#allocation4]  }
  0x8d   :  { %171 = dma.done.wait [#allocation4], 16  }
  0x8e   :  { %172 = vsyncadd [#allocation4], 4294967280 }
  0x8f   :  { %87 = vsyncpa [#allocation3], 1 }
  0x90   :  { %88 = vsyncpa [#allocation6], 1 }
  0x91   :  { %89 = vsyncpa [#allocation4], 1 }

</bundles_post_ra>
